<compile_context>
chip_gen: v7x
topology: tpu7x:2x2x1
jax: 0.10.0
libtpu: 0.0.40
codegen_flags: <defaults>
</compile_context>

<pallas_src>
import jax
import jax.numpy as jnp
from jax.experimental import pallas as pl
from jax.experimental.pallas import tpu as pltpu


def cam_kernel(gamma_ref, x_ref, o_ref, xb_ref):
    """One (batch, channel-row-block) step of channel attention.

    gamma_ref: (1,) f32 scalar in SMEM.
    x_ref:     (1, C, H) input slab (keys/values AND source of query rows);
               its block index only depends on the batch axis, so it stays
               resident in VMEM across the row-block axis (no re-DMA).
    o_ref:     (1, CB, H) output block.
    xb_ref:    (C, H) bf16 persistent scratch (hoisted MXU-operand copy).
    """
    r = pl.program_id(1)
    CB = o_ref.shape[1]

    # Fill the bf16 slab copy once per batch.  The row-block axis is declared
    # "arbitrary" (sequential on one core), so r == 0 always runs before the
    # steps that consume the scratch.
    @pl.when(r == 0)
    def _():
        xb_ref[...] = x_ref[0].astype(jnp.bfloat16)

    row0 = r * CB
    if CB % 8 == 0:
        # Tile-aligned sublane offset -> zero-copy view of the resident slab.
        row0 = pl.multiple_of(row0, 8)

    xq = x_ref[0, pl.ds(row0, CB), :]            # (CB, H) f32 rows (residual)
    xq_b = xb_ref[pl.ds(row0, CB), :]            # (CB, H) bf16 query rows
    xkv_b = xb_ref[...]                          # (C, H) bf16 keys/values

    # energy[i, j] = <x[row0+i, :], x[j, :]>: contract the last dims directly
    # on the MXU (transposed-RHS matmul; no XLU transpose / (H, C) copy).
    energy = jax.lax.dot_general(
        xq_b, xkv_b,
        dimension_numbers=(((1,), (1,)), ((), ())),
        preferred_element_type=jnp.float32)      # (CB, C) f32

    # softmax(rowmax - energy) over the last dim.  Softmax is shift-invariant
    # per row, so this equals exp(rowmin - energy) / rowsum: exponent <= 0,
    # already numerically stable, with a single row reduction.
    e_min = jnp.min(energy, axis=-1, keepdims=True)        # (CB, 1)
    p = jnp.exp(e_min - energy)                            # (CB, C)
    rowsum = jnp.sum(p, axis=-1, keepdims=True)            # (CB, 1)

    gamma = gamma_ref[0]
    # Fold gamma into the normalization (scales a (CB, C) tensor once instead
    # of the (CB, H) output); the divide is an EUP reciprocal (exact variant
    # for closer parity with the PyTorch softmax, still off the VALU path).
    scale = gamma * pl.reciprocal(rowsum, approx=False)
    attn = (p * scale).astype(jnp.bfloat16)                # (CB, C) bf16

    out = jax.lax.dot_general(
        attn, xkv_b,
        dimension_numbers=(((1,), (0,)), ((), ())),
        preferred_element_type=jnp.float32)                # (CB, H) f32

    # Residual add against the exact f32 input rows.
    o_ref[0] = (out + xq.astype(jnp.float32)).astype(o_ref.dtype)


def _vmem_capacity_bytes():
    try:
        return int(pltpu.get_tpu_info().vmem_capacity_bytes)
    except Exception:
        return 64 << 20          # conservative: v7x per-TensorCore VMEM


def _est_vmem_bytes(C, H, CB, kv_bufs):
    """Conservative working-set estimate for one grid step."""
    f32, bf16 = 4, 2
    slab_in = kv_bufs * C * H * f32        # (1, C, H) input slab buffer(s)
    out_blk = 2 * CB * H * f32             # double-buffered (1, CB, H) output
    bf16_slab = C * H * bf16               # persistent bf16 scratch
    interm = CB * C * (2 * f32 + bf16)     # energy, p (f32) + attn (bf16)
    row_tmp = 3 * CB * H * f32             # xq rows, matmul result, residual
    return slab_in + out_blk + bf16_slab + interm + row_tmp


def _plan_tiling(C, H, vmem_budget):
    """Pick (row block CB, slab buffer count) so the working set fits VMEM."""
    cb_cands = [cb for cb in (256, 128) if C % cb == 0 and C >= 2 * cb]
    if not cb_cands:
        cb_cands = [C]                     # single row block of all channels
    for kv_bufs in (2, 1):                 # prefer overlapped slab DMA
        for cb in cb_cands:                # prefer larger row blocks
            if _est_vmem_bytes(C, H, cb, kv_bufs) <= vmem_budget:
                return cb, kv_bufs
    # TODO(synk): for C*H too large even single-buffered (e.g. C=512 with
    # H*W >~ 12K on 64 MiB-VMEM parts), stream (C, Ht) H-tiles of the slab via
    # pltpu.emit_pipeline (pass 1: accumulate energy; pass 2: attn @ x).
    return cb_cands[-1], 1


def cam_module_forward(x, gamma):
    """x: (B, C, H) float32, gamma: (1,) float32 -> (B, C, H)."""
    B, C, H = x.shape

    capacity = _vmem_capacity_bytes()
    budget = max(capacity - (12 << 20), 32 << 20)
    CB, kv_bufs = _plan_tiling(C, H, budget)
    n_row_blocks = C // CB

    est = _est_vmem_bytes(C, H, CB, kv_bufs)
    vmem_limit = int(min(max(est + (16 << 20), 32 << 20), capacity - (8 << 20)))

    kv_spec_kwargs = {}
    if kv_bufs == 1:
        # Single-buffer the largest operand on small-VMEM parts: its block
        # index only changes at batch boundaries, so the lost overlap is one
        # slab DMA per batch.
        kv_spec_kwargs["pipeline_mode"] = pl.Buffered(1)

    cost = pl.CostEstimate(
        flops=4 * B * C * C * H,            # two CxCxH matmuls per batch
        transcendentals=B * C * C,          # softmax exp
        bytes_accessed=2 * B * C * H * 4 + 4,   # read x once + write out
    )

    return pl.pallas_call(
        cam_kernel,
        out_shape=jax.ShapeDtypeStruct((B, C, H), x.dtype),
        grid=(B, n_row_blocks),
        in_specs=[
            pl.BlockSpec(memory_space=pltpu.MemorySpace.SMEM),       # gamma
            pl.BlockSpec((1, C, H), lambda b, r: (b, 0, 0),          # x slab
                         **kv_spec_kwargs),
        ],
        out_specs=pl.BlockSpec((1, CB, H), lambda b, r: (b, r, 0)),
        scratch_shapes=[pltpu.VMEM((C, H), jnp.bfloat16)],
        compiler_params=pltpu.CompilerParams(
            # Batch axis megacore-sharded; row-block axis sequential so the
            # r == 0 scratch fill runs on the consuming core and the slab is
            # read from HBM once per batch per core.
            dimension_semantics=("parallel", "arbitrary"),
            vmem_limit_bytes=vmem_limit,
        ),
        cost_estimate=cost,
    )(gamma, x)


def cam_module_reference(x, gamma):
    """Pure-JAX f32 reference mirroring the PyTorch forward."""
    energy = jnp.einsum("bch,bkh->bck", x, x)
    energy_new = jnp.max(energy, axis=-1, keepdims=True) - energy
    attention = jax.nn.softmax(energy_new, axis=-1)
    out = jnp.einsum("bck,bkh->bch", attention, x)
    return gamma[0] * out + x


def cam_module_reference_bf16(x, gamma):
    """Reference mirroring the kernel's bf16-operand / f32-accumulate math."""
    xb = x.astype(jnp.bfloat16)
    energy = jax.lax.dot_general(
        xb, xb, dimension_numbers=(((2,), (2,)), ((0,), (0,))),
        preferred_element_type=jnp.float32)
    e_min = jnp.min(energy, axis=-1, keepdims=True)
    p = jnp.exp(e_min - energy)
    rowsum = jnp.sum(p, axis=-1, keepdims=True)
    attn = (p * (gamma[0] / rowsum)).astype(jnp.bfloat16)
    out = jax.lax.dot_general(
        attn, xb, dimension_numbers=(((2,), (1,)), ((0,), (0,))),
        preferred_element_type=jnp.float32)
    return out + x.astype(jnp.float32)


if __name__ == "__main__":
    key = jax.random.PRNGKey(0)
    B, C, H = 2, 4, 16
    x = jax.random.normal(key, (B, C, H), dtype=jnp.float32)

    # gamma is initialized to zero in the PyTorch module; use a nonzero
    # deterministic value so the attention path is actually exercised.
    gamma = jnp.array([0.5], dtype=jnp.float32)

    out = jax.block_until_ready(cam_module_forward(x, gamma))
    assert out.shape == (B, C, H)

    # Tight check against a reference with the same bf16-operand matmul math.
    ref_mirror = cam_module_reference_bf16(x, gamma)
    assert jnp.allclose(out, ref_mirror, atol=1e-2, rtol=1e-2), \
        "mismatch vs bf16-mirrored reference"

    # Sanity check against the exact f32 module semantics (bf16 MXU operands
    # introduce ~1e-2-level differences, hence the looser tolerance).
    ref_f32 = cam_module_reference(x, gamma)
    assert jnp.allclose(out, ref_f32, atol=1.5e-1, rtol=1.5e-1), \
        "mismatch vs f32 reference"

    print("KERNEL_OK")
</pallas_src>

<mosaic_0001>
module attributes {stable_mosaic.version = 11 : i64} {
  func.func @cam_kernel(%arg0: i32, %arg1: i32, %arg2: memref<1xf32, #tpu.memory_space<smem>>, %arg3: memref<1x4x16xf32, #tpu.memory_space<vmem>>, %arg4: memref<1x4x16xf32, #tpu.memory_space<vmem>>, %arg5: memref<4x16xbf16, #tpu.memory_space<vmem>>) attributes {dimension_semantics = [#tpu.dimension_semantics<parallel>, #tpu.dimension_semantics<arbitrary>], iteration_bounds = array<i64: 2, 1>, scalar_prefetch = 0 : i64, scratch_operands = 1 : i64, tpu.core_type = #tpu.core_type<tc>, window_params = [{transform_indices = @transform_0, window_bounds = array<i64: 1>}, {transform_indices = @transform_1, window_bounds = array<i64: 1, 4, 16>}, {transform_indices = @transform_2, window_bounds = array<i64: 1, 4, 16>}]} {
    %c0_i32 = arith.constant 0 : i32
    %0 = arith.cmpi eq, %arg1, %c0_i32 : i32
    %1 = arith.extui %0 : i1 to i32
    %c0_i32_0 = arith.constant 0 : i32
    %2 = arith.cmpi ne, %1, %c0_i32_0 : i32
    scf.if %2 {
      %c0_12 = arith.constant 0 : index
      %c0_13 = arith.constant 0 : index
      %c0_14 = arith.constant 0 : index
      %30 = vector.load %arg3[%c0_12, %c0_13, %c0_14] : memref<1x4x16xf32, #tpu.memory_space<vmem>>, vector<1x4x16xf32>
      %31 = vector.shape_cast %30 : vector<1x4x16xf32> to vector<4x16xf32>
      %32 = arith.truncf %31 : vector<4x16xf32> to vector<4x16xbf16>
      %c0_15 = arith.constant 0 : index
      %c0_16 = arith.constant 0 : index
      %33 = vector.load %arg5[%c0_15, %c0_16] : memref<4x16xbf16, #tpu.memory_space<vmem>>, vector<4x16xbf16>
      tpu.vector_store %arg5[%c0_15, %c0_16], %32 {strides = array<i32>} : memref<4x16xbf16, #tpu.memory_space<vmem>>, vector<4x16xbf16>,
    } else {
    }
    %c4_i32 = arith.constant 4 : i32
    %3 = arith.muli %arg1, %c4_i32 : i32
    %c0 = arith.constant 0 : index
    %4 = arith.index_cast %3 : i32 to index
    %c0_1 = arith.constant 0 : index
    %5 = vector.load %arg3[%c0, %4, %c0_1] : memref<1x4x16xf32, #tpu.memory_space<vmem>>, vector<1x4x16xf32>
    %6 = vector.shape_cast %5 : vector<1x4x16xf32> to vector<4x16xf32>
    %7 = arith.index_cast %3 : i32 to index
    %c0_2 = arith.constant 0 : index
    %8 = vector.load %arg5[%7, %c0_2] : memref<4x16xbf16, #tpu.memory_space<vmem>>, vector<4x16xbf16>
    %c0_3 = arith.constant 0 : index
    %c0_4 = arith.constant 0 : index
    %9 = vector.load %arg5[%c0_3, %c0_4] : memref<4x16xbf16, #tpu.memory_space<vmem>>, vector<4x16xbf16>
    %cst = arith.constant dense<0.000000e+00> : vector<4x4xf32>
    %10 = tpu.matmul %8, %9, %cst {dimension_numbers = #tpu.dot_dimension_numbers<[1], [1], [0], [0], [0, 0, 1, 0], [], []>} : vector<4x16xbf16>, vector<4x16xbf16>, vector<4x4xf32> -> vector<4x4xf32>
    %cst_5 = arith.constant dense<0x7F800000> : vector<4xf32>
    %11 = vector.multi_reduction <minimumf>, %10, %cst_5 [1] : vector<4x4xf32> to vector<4xf32>
    %12 = vector.shape_cast %11 : vector<4xf32> to vector<4x1xf32>
    %13 = vector.broadcast %12 : vector<4x1xf32> to vector<4x4xf32>
    %14 = arith.subf %13, %10 : vector<4x4xf32>
    %15 = math.exp %14 : vector<4x4xf32>
    %cst_6 = arith.constant dense<0.000000e+00> : vector<4xf32>
    %16 = vector.multi_reduction <add>, %15, %cst_6 [1] : vector<4x4xf32> to vector<4xf32>
    %17 = vector.shape_cast %16 : vector<4xf32> to vector<4x1xf32>
    %c0_7 = arith.constant 0 : index
    %18 = memref.load %arg2[%c0_7] : memref<1xf32, #tpu.memory_space<smem>>
    %19 = tpu.reciprocal %17 : vector<4x1xf32> -> vector<4x1xf32>
    %20 = vector.broadcast %18 : f32 to vector<4x1xf32>
    %21 = arith.mulf %20, %19 : vector<4x1xf32>
    %22 = vector.broadcast %21 : vector<4x1xf32> to vector<4x4xf32>
    %23 = arith.mulf %15, %22 : vector<4x4xf32>
    %24 = arith.truncf %23 : vector<4x4xf32> to vector<4x4xbf16>
    %cst_8 = arith.constant dense<0.000000e+00> : vector<4x16xf32>
    %25 = tpu.matmul %24, %9, %cst_8 {dimension_numbers = #tpu.dot_dimension_numbers<[1], [0], [0], [1], [0, 0, 1, 1], [], []>} : vector<4x4xbf16>, vector<4x16xbf16>, vector<4x16xf32> -> vector<4x16xf32>
    %26 = arith.addf %25, %6 : vector<4x16xf32>
    %c0_9 = arith.constant 0 : index
    %c0_10 = arith.constant 0 : index
    %c0_11 = arith.constant 0 : index
    %27 = vector.load %arg4[%c0_9, %c0_10, %c0_11] : memref<1x4x16xf32, #tpu.memory_space<vmem>>, vector<1x4x16xf32>
    %28 = vector.shape_cast %27 : vector<1x4x16xf32> to vector<4x16xf32>
    %29 = vector.shape_cast %26 : vector<4x16xf32> to vector<1x4x16xf32>
    tpu.vector_store %arg4[%c0_9, %c0_10, %c0_11], %29 {strides = array<i32>} : memref<1x4x16xf32, #tpu.memory_space<vmem>>, vector<1x4x16xf32>,
    return
  }
  func.func @transform_0(%arg0: i32, %arg1: i32) -> i32 {
    %c0_i32 = arith.constant 0 : i32
    %c0_i32_0 = arith.constant 0 : i32
    return %c0_i32 : i32
  }
  func.func @transform_1(%arg0: i32, %arg1: i32) -> (i32, i32, i32) {
    %c0_i32 = arith.constant 0 : i32
    %c0_i32_0 = arith.constant 0 : i32
    %c0_i32_1 = arith.constant 0 : i32
    return %arg0, %c0_i32, %c0_i32_0 : i32, i32, i32
  }
  func.func @transform_2(%arg0: i32, %arg1: i32) -> (i32, i32, i32) {
    %c0_i32 = arith.constant 0 : i32
    %c0_i32_0 = arith.constant 0 : i32
    return %arg0, %arg1, %c0_i32 : i32, i32, i32
  }
}

</mosaic_0001>

<bundles_post_ra>
// kernel: tpu_custom_call.1
= control target key start
LH: loop header
LB: loop body
LE: loop exit
PB: predicated region body
PF: predicated region fallthrough
CT: control target
= control target key end

     0   :  { %s817_s0 = inlined_call_operand.<no memory space> [shape: f32[1], index: 0, kind: input, shape index: {}]   ;;  %s818_s1 = inlined_call_operand.hbm [shape: f32[2,4,16], index: 1, kind: input, shape index: {}]   ;;  %s819_s2 = inlined_call_operand.hbm [shape: f32[2,4,16], index: 2, kind: output, shape index: {}]  }
   0x1   :  { %7 = sst [smem:[#allocation3]] %s817_s0 }
   0x2   :  { %8 = vsyncpa [#allocation5], 0 }
   0x3   :  { %10 = vsyncpa [#allocation5 + $0x1], 0 }
   0x4   :  { %11 = vsyncpa [#allocation6], 0 }
   0x5   :  { %13 = vsyncpa [#allocation6 + $0x1], 0  ;;  %s637_s11 = smov 0   ;;  %s639_s12 = smov 0  }
   0x6   :  { %s641_s13 = smov 0   ;;  %s643_s14 = smov 0  }
   0x7   :  { %s645_s15 = smov 0   ;;  %s647_s16 = smov 0  }
   0x8 LB: > { %s402_s0 = sadd.s32 4294967295, %s613_s16   ;;  %s403_s17 = sadd.s32 4294967294, %s613_s16   ;;  %s613_s16 = sphi %s647_s16, %s19_s16   ;;  %s609_s15 = sphi %s645_s15, %s835_s15   ;;  %s605_s14 = sphi %s643_s14, %s834_s14   ;;  %s601_s13 = sphi %s641_s13, %s833_s13   ;;  %s597_s12 = sphi %s639_s12, %s832_s12   ;;  %s593_s11 = sphi %s637_s11, %s831_s11  }
   0x9   : > { %s31_s18 = sadd.s32 1, %s609_s15  ;;  %s59_s19 = sadd.s32 1, %s601_s13 }
   0xa   : > { %p33_p0 = scmp.ge.s32.totalorder %s31_s18, 2  ;;  %p66_p1 = scmp.ne.s32.totalorder %s601_s13, %s597_s12 }
   0xb   : > { %p67_p2 = scmp.eq.s32.totalorder %s613_s16, 0  ;;  %p72_p3 = scmp.ne.s32.totalorder %s597_s12, %s593_s11 }
   0xc   : > { %s837_s18 = smov (%p33_p0, %s31_s18), 0  ;;  %p73_p5 = scmp.eq.s32.totalorder %s402_s0, 0 }
   0xd   : > { %p678_p4 = por %p67_p2, %p66_p1  ;;  %s56_s21 = ssub.s32 %s609_s15, %s837_s18 }
   0xe   : > { %p98_p6 = scmp.eq.s32.totalorder %s402_s0, 1  ;;  %p57_p7 = scmp.eq.s32.totalorder %s56_s21, 0 }
   0xf   : > { %p684_p8 = por %p73_p5, %p72_p3  ;;  %p104_p10 = scmp.eq.s32.totalorder %s403_s17, 1 }
  0x10   : > { %p688_p9 = por %p98_p6, %p66_p1  ;;  %p445_p13 = scmp.lt.s32.totalorder %s613_s16, 2 }
  0x11   : > { %s693_s24 = scalar_select %p57_p7, %s601_s13, %s59_s19  }
  0x12   : > { %s823_s23 = scalar_select %p688_p9, 1, 0 }
  0x13   : > { %p695_p11 = por %p104_p10, %p72_p3  ;;  %s127_s26 = sand.u32 1, %s601_s13  }
  0x14   : > { %s406_s27 = sshll.u32 %s127_s26, 2  ;;  %s407_s28 = sshll.u32 %s609_s15, 6 }
  0x15   : > { %s824_s25 = scalar_select %p695_p11, 1, 0 }
  0x16   : > { %s706_s3 = scalar_lea.hbm %s818_s1, %s407_s28  ;;  %s131_s4 = scalar_lea.vmem [#allocation4], %s406_s27 }
  0x17   : > { %s138_s5 = sshll.u32 %s131_s4, 4  ;;  %p712_p0 = pnand %p445_p13, %p678_p4  ;;  %s708_s5 = int_to_ptr.vmem [resolvable:$true] %s138_s5 }
  0x18   : > { %s128_s7 = scalar_lea.sflag [#allocation5], %s127_s26  ;;  %s501_s8 = scalar_lea.hbm %s706_s3, 64 }
  0x19   : > { %p502_p3 = scmp.ne.s32.totalorder %s706_s3, %s501_s8  ;;  %p503_p5 = pneg %p712_p0 }
  0x1a   : > { %s506_s0 = scalar_lea.hbm %s818_s1, 128  ;;  %p507_p4 = scmp.lt.u32.totalorder %s706_s3, %s818_s1 }
  0x1b   : > { %p504_p6 = pnand %p503_p5, %p502_p3  ;;  %p508_p10 = scmp.lt.u32.totalorder %s506_s0, %s501_s8 }
  0x1c   : > { %p510_p12 = scmp.lt.u32.totalorder %s501_s8, %s706_s3 }
  0x1d   : > { %p505_p7 = pneg %p504_p6  ;;  %p509_p13 = por %p508_p10, %p507_p4 }
  0x1f   : > { %p511_p1 = por %p510_p12, %p509_p13 }
  0x21   : > { %p512_p2 = pnand %p511_p1, %p505_p7 }
  0x23   : > { %515 = shalt.err (!%p512_p2)
}
  0x24   : > { %s516_s20 = scalar_lea.vmem %s708_s5, 64  ;;  %s615_s21 = smov [#allocation4]  }
  0x25   : > { %p517_p3 = scmp.ne.s32.totalorder %s708_s5, %s516_s20  ;;  %s521_s26 = sshll.u32 %s615_s21, 4  ;;  %s522_s26 = int_to_ptr.vmem [resolvable:$false] %s521_s26 }
  0x26   : > { %s523_s27 = scalar_lea.vmem %s522_s26, 128  ;;  %p524_p9 = scmp.lt.s32.totalorder %s708_s5, %s522_s26 }
  0x27   : > { %p519_p6 = pnand %p517_p3, %p503_p5  ;;  %p525_p4 = scmp.lt.s32.totalorder %s523_s27, %s516_s20 }
  0x29   : > { %p520_p11 = pneg %p519_p6  ;;  %p526_p10 = por %p525_p4, %p524_p9 }
  0x2b   : > { %p527_p12 = pnand %p526_p10, %p520_p11 }
  0x2d   : > { %530 = shalt.err (!%p527_p12)
}
  0x2e   : > { %440 = dma.hbm_to_vmem [thread:$0]  (!%p712_p0), %s706_s3, 64, %s708_s5, %s128_s7  }
  0x2f   : > { %p826_p1 = scmp.lt.s32.totalorder %s613_s16, 3  ;;  %p827_p2 = scmp.ge.s32.totalorder %s613_s16, 1 }
  0x31   : > { %p144_p5 = pnand %p827_p2, %p826_p1 }
  0x32   : > { %s748_s28 = sand.u32 (!%p144_p5), 1, %s597_s12  }
  0x33   : > { %147 = sbr.rel (%p144_p5) target bundleno = 836 (0x344), region = 28  ;;  %s409_s29 = sshll.u32 (!%p144_p5), %s748_s28, 2 }
  0x34   : > { %s150_s30 = scalar_lea.sflag (!%p144_p5), [#allocation5], %s748_s28  ;;  %s754_s4 = scalar_lea.vmem (!%p144_p5), [#allocation4], %s409_s29 }
  0x3a   : > { %584 = dma.done.wait (%p684_p8), %s150_s30, 64  }
  0x3b   : > { %586 = vsyncadd (%p684_p8), %s150_s30, 4294967232  ;;  %v616_v0 = vmov 0.0   ;;  %vm617_vm0 = vmmov 0   ;;  %v179_v1 = vld [vmem:[%s754_s4] sm:$0xf]  ;;  %vm181_vm1 = vcmask 123904  }
  0x3c   : > { %421 = vmatprep.subr.bf16.mxu0 %v616_v0  ;;  %423 = vmatprep.mubr.msk.bf16.mxu0 %vm617_vm0, %v616_v0  ;;  %v180_v2 = vpack.c.bf16 %v179_v1, %v179_v1  ;;  %vm192_vm2 = vcmask 130048   ;;  %vm239_vm3 = vcmask 27648   ;;  %vm259_vm4 = vcmask 1041408   ;;  %s249_s22 = sld [smem:[#allocation3]]  ;;  %v185_v23 = vld [vmem:[%s754_s4] sm:$0xf] }
  0x3d   : > { %427 = vmatprep.subr.bf16.mxu1 %v616_v0  ;;  %429 = vmatprep.mubr.msk.bf16.mxu1 %vm617_vm0, %v616_v0  ;;  %vm255_vm5 = vcmask 31744   ;;  %s414_s3 = sshll.u32 %s605_s14, 6  ;;  %s173_s5 = scalar_lea.vmem [#allocation7], %s409_s29  ;;  %vm302_vm6 = vcmask 125952  }
  0x3e   : > { %182 = vst.msk [vmem:[#allocation2] sm:$0x3] %vm181_vm1, %v180_v2  ;;  %s319_s6 = sshll.u32 %s173_s5, 4  ;;  %s768_s9 = scalar_lea.hbm %s819_s2, %s414_s3  ;;  %s770_s6 = int_to_ptr.vmem [resolvable:$true] %s319_s6 }
  0x3f   : > { %s305_s14 = scalar_lea.sflag [#allocation6], %s748_s28  ;;  %s531_s10 = scalar_lea.vmem %s770_s6, 64 }
  0x40   : > { %p532_p8 = scmp.ne.s32.totalorder %s770_s6, %s531_s10  ;;  %p828_p9 = scmp.ne.s32.totalorder %s823_s23, 0 }
  0x41   : > { %s618_s0 = smov [#allocation7]  }
  0x42   : > { %v251_v18 = vstv %s249_s22  ;;  %p533_p11 = pnand %p532_p8, %p828_p9  ;;  %s535_s17 = sshll.u32 %s618_s0, 4  ;;  %s536_s17 = int_to_ptr.vmem [resolvable:$false] %s535_s17 }
  0x43   : > { %s537_s19 = scalar_lea.vmem %s536_s17, 128  ;;  %p538_p7 = scmp.lt.s32.totalorder %s770_s6, %s536_s17 }
  0x44   : > { %p534_p0 = pneg %p533_p11  ;;  %p539_p13 = scmp.lt.s32.totalorder %s537_s19, %s531_s10 }
  0x45   : > { %v191_v3 = vld [vmem:[#allocation2] sm:$0x3] }
  0x46   : > { %v197_v4 = vsel %vm192_vm2, %v191_v3, 0  ;;  %v190_v5 = vld [vmem:[#allocation2] sm:$0x3]  ;;  %v260_v16 = vsel %vm259_vm4, %v191_v3, 0  ;;  %p540_p3 = por %p539_p13, %p538_p7 }
  0x47   : > { %422 = vmatpush3.bf16.xpose.msra.mxu0 %v197_v4  ;;  %428 = vmatpush3.bf16.msra.mxu1 %v260_v16 }
  0x48   : > { %p541_p6 = pnand %p540_p3, %p534_p0 }
  0x4e   : > { %424 = vmatmul.mubr.msk.bf16.vlgmr.msra.gmra.mrb[0].mxu0 %vm192_vm2, %v190_v5 }
 0x121   : > { %v233_v6 = vpop.f32.mrb[0].mxu0 }
 0x122   : > { %v425_v7 = vpop.f32.mrb[1].mxu0  ;;  %v240_v8 = vsel %vm239_vm3, %v233_v6, inf }
 0x123   : > { %241 = vmin.xlane.f32.xlu0 %v240_v8  ;;  %v236_v9 = vpop.f32.mrb[2].mxu0 }
 0x124   : > { %v426_v10 = vpop.f32.mrb[3].mxu0 }
 0x1b0   : > { %v242_v11 = vpop.xlane.xlu0 %241 }
 0x1b1   : > { %v243_v12 = vsub.f32 %v242_v11, %v233_v6 }
 0x1b3   : > { %v244_v13 = vmul.f32 1.442695, %v243_v12 }
 0x1b5   : > { %497 = vpow2.f32 %v244_v13 }
 0x1bf   : > { %v498_v14 = vpop.eup %497 }
 0x1c0   : > { %v246_v15 = vsel %vm239_vm3, %v498_v14, 0.0 }
 0x1c1   : > { %247 = vadd.xlane.f32.xlu0 %v246_v15 }
 0x24e   : > { %v248_v17 = vpop.xlane.xlu0 %247 }
 0x24f   : > { %499 = vrcp.f32 %v248_v17 }
 0x259   : > { %v500_v19 = vpop.eup %499 }
 0x25a   : > { %v252_v20 = vmul.f32 %v500_v19, %v251_v18 }
 0x25c   : > { %v253_v21 = vmul.f32 %v498_v14, %v252_v20 }
 0x25e   : > { %v254_v22 = vpack.c.bf16 %v253_v21, %v253_v21 }
 0x260   : > { %430 = vmatmul.mubr.msk.bf16.vlgmr.msra.gmra.mrb[0].mxu1 %vm255_vm5, %v254_v22 }
 0x333   : > { %v296_v24 = vpop.f32.mrb[0].mxu1 }
 0x334   : > { %v297_v25 = vadd.f32 %v296_v24, %v185_v23  ;;  %v431_v26 = vpop.f32.mrb[1].mxu1 }
 0x335   : > { %v299_v27 = vpop.f32.mrb[2].mxu1 }
 0x336   : > { %v432_v28 = vpop.f32.mrb[3].mxu1  ;;  %303 = vst.msk [vmem:[%s173_s5] sm:$0xf] %vm302_vm6, %v297_v25 }
 0x337   : > { %544 = shalt.err (!%p541_p6)
}
 0x338   : > { %s545_s20 = scalar_lea.hbm %s768_s9, 64  ;;  %s549_s27 = scalar_lea.hbm %s819_s2, 128 }
 0x339   : > { %p546_p4 = scmp.ne.s32.totalorder %s768_s9, %s545_s20  ;;  %p550_p1 = scmp.lt.u32.totalorder %s768_s9, %s819_s2 }
 0x33a   : > { %p551_p2 = scmp.lt.u32.totalorder %s549_s27, %s545_s20  ;;  %p553_p8 = scmp.lt.u32.totalorder %s545_s20, %s768_s9 }
 0x33b   : > { %p547_p10 = pnand %p546_p4, %p828_p9 }
 0x33c   : > { %p552_p5 = por %p551_p2, %p550_p1 }
 0x33d   : > { %p548_p12 = pneg %p547_p10 }
 0x33e   : > { %p554_p11 = por %p553_p8, %p552_p5 }
 0x340   : > { %p555_p0 = pnand %p554_p11, %p548_p12 }
 0x342   : > { %558 = shalt.err (!%p555_p0)
}
 0x343   : > { %435 = dma.vmem_to_hbm [thread:$0]  (%p828_p9), %s770_s6, 64, %s768_s9, %s305_s14  }
 0x344 PF: > { %s331_s30 = sand.u32 1, %s593_s11   ;;  %p829_p7 = scmp.ne.s32.totalorder %s824_s25, 0 }
 0x345   : > { %p830_p13 = scmp.ge.s32.totalorder %s613_s16, 2  ;;  %s332_s4 = scalar_lea.sflag [#allocation6], %s331_s30 }
 0x347   : > { %p442_p3 = pnand %p830_p13, %p829_p7 }
 0x349   : > { %588 = dma.done.wait (!%p442_p3), %s332_s4, 64  }
 0x34a   : > { %590 = vsyncadd (!%p442_p3), %s332_s4, 4294967232  ;;  %s19_s16 = sadd.s32 1, %s613_s16   ;;  %s831_s11 = smov %s597_s12 }
 0x34b   : > { %p16_p6 = scmp.ge.s32.totalorder %s19_s16, 4   ;;  %s832_s12 = smov %s601_s13 }
 0x34c   : > { %s833_s13 = smov %s693_s24  ;;  %s834_s14 = smov %s609_s15 }
 0x34d   : > { %s835_s15 = smov %s837_s18  ;;  %18 = sbr.rel (!%p16_p6) target bundleno = 8 (0x8), region = 79 }
 0x354   :  { %337 = vsyncpa [#allocation5], 1 }
 0x355   :  { %339 = vsyncpa [#allocation5 + $0x1], 1 }
 0x356   :  { %340 = vsyncpa [#allocation6], 1 }
 0x357   :  { %342 = vsyncpa [#allocation6 + $0x1], 1 }

</bundles_post_ra>
